<compile_context>
chip_gen: v7x
topology: tpu7x:2x2x1
jax: 0.10.0
libtpu: 0.0.40
codegen_flags: <defaults>
</compile_context>

<pallas_src>
import jax
import jax.numpy as jnp
from jax.experimental import pallas as pl
from jax.experimental.pallas import tpu as pltpu


# Fixed head layout of the MM-MT model: decomp / los / ihm / pheno / readmit / ltm.
HEAD_NAMES = ("decomp", "los", "ihm", "pheno", "readmit", "ltm")
HEAD_WIDTHS = (1, 10, 1, 25, 1, 1)
_offs = [0]
for _w in HEAD_WIDTHS:
    _offs.append(_offs[-1] + _w)
HEAD_OFFSETS = tuple(_offs)                        # (0, 1, 11, 12, 37, 38, 39)
O_TOTAL = HEAD_OFFSETS[-1]                         # 39
O_PAD = max(128, -(-O_TOTAL // 128) * 128)         # 128 -> lane-dense head slab
LOS_LO, LOS_HI = HEAD_OFFSETS[1], HEAD_OFFSETS[2]  # los head columns: no sigmoid
LOS_ROW, IHM_ROW = 23, 47                          # timestep reads of the module


# -----------------------------------------------------------------------------
# Fused kernel: FeatureSpreadWTime + mm_encoder + all six task heads.
# One grid step covers block_b batch elements ("parallel" -> megacore friendly).
# -----------------------------------------------------------------------------
def mm_mt_fused_kernel(ts_ref, texts_ref, wmat_ref, w_ts_ref, w_txt_ref,
                       b_enc_ref, w_heads_ref, b_heads_ref, heads_ref):
    bb, t, d_ts = ts_ref.shape
    _, n_docs, _ = texts_ref.shape
    h = w_ts_ref.shape[1]

    # --- time-series branch: one (bb*t, d_ts) @ (d_ts, h) MXU matmul.
    #     (No lane-axis concatenate; the text half is accumulated separately.)
    ts_flat = ts_ref[...].reshape(bb * t, d_ts)
    pre = jnp.dot(ts_flat, w_ts_ref[...], preferred_element_type=jnp.float32)
    pre = pre.reshape(bb, t, h) + b_enc_ref[...]             # (bb, t, h) f32

    # --- text branch, re-associated: project the n_docs doc features to h
    #     first (tiny MXU dots), then spread across time with n_docs broadcast
    #     FMAs on the VPU (a K=n_docs MXU dot would be ~97% padding).
    wmat = wmat_ref[...]                                      # (bb, t, n) f32
    tproj = jnp.stack(
        [jnp.dot(texts_ref[b], w_txt_ref[...],
                 preferred_element_type=jnp.float32) for b in range(bb)],
        axis=0)                                               # (bb, n, h) f32
    for n in range(n_docs):                                   # static unroll
        pre = pre + wmat[:, :, n:n + 1] * tproj[:, n:n + 1, :]
    enc = jnp.tanh(pre)                                       # (bb, t, h) f32

    # --- all six heads fused: one lane-dense (bb*t, h) @ (h, 128) MXU matmul,
    #     sigmoid on every column except the los range (f32 on VPU/EUP).
    enc_flat = enc.reshape(bb * t, h).astype(w_heads_ref.dtype)
    y = (jnp.dot(enc_flat, w_heads_ref[...],
                 preferred_element_type=jnp.float32)
         + b_heads_ref[...])                                  # (bb*t, 128) f32
    col = jax.lax.broadcasted_iota(jnp.int32, y.shape, 1)
    no_sigmoid = (col >= LOS_LO) & (col < LOS_HI)
    y = jnp.where(no_sigmoid, y, jax.nn.sigmoid(y))
    heads_ref[...] = y.reshape(bb, t, O_PAD)


# -----------------------------------------------------------------------------
# One-time (host-side) parameter packing: scaled, padded, MXU-dtype weights.
# -----------------------------------------------------------------------------
def pack_mm_mt_params(params, n_docs, mxu_dtype=jnp.bfloat16):
    w_heads = jnp.concatenate([params["w_" + n] for n in HEAD_NAMES], axis=1)
    b_heads = jnp.concatenate([params["b_" + n] for n in HEAD_NAMES], axis=1)
    assert w_heads.shape[1] == O_TOTAL
    w_heads = jnp.pad(w_heads, ((0, 0), (0, O_PAD - O_TOTAL)))
    b_heads = jnp.pad(b_heads, ((0, 0), (0, O_PAD - O_TOTAL)))
    return {
        "w_ts": params["w_ts"].astype(mxu_dtype),
        # 1/N_docs of FeatureSpreadWTime folded into the text projection.
        "w_txt": (params["w_txt"] / float(n_docs)).astype(mxu_dtype),
        "b_enc": params["b_enc"].astype(jnp.float32),
        "w_heads": w_heads.astype(mxu_dtype),
        "b_heads": b_heads.astype(jnp.float32),
    }


def _pick_block_b(batch, t, target_rows=512):
    """Largest divisor of `batch` keeping block_b*t <= target_rows, preferring
    >= 2 grid steps so both v7x TensorCores get work."""
    divisors = [d for d in range(1, batch + 1) if batch % d == 0]
    cands = [d for d in divisors if d * t <= target_rows] or [1]
    bb = max(cands)
    if batch > 1 and batch // bb == 1:
        smaller = [d for d in cands if d <= batch // 2]
        if smaller:
            bb = max(smaller)
    return bb


# -----------------------------------------------------------------------------
# Full MultiModalMultiTaskWrapper forward: ONE pallas_call for everything.
# -----------------------------------------------------------------------------
def mm_mt_forward(packed, ts, texts, texts_weight_mat, *, block_b=None):
    # ts: (T, B, D_ts) -- PyTorch convention; batch_size = ts.shape[1]
    T, B, D_ts = ts.shape
    _, N, D_txt = texts.shape
    H = packed["w_ts"].shape[1]
    mxu_dtype = packed["w_ts"].dtype
    itemsize = jnp.dtype(mxu_dtype).itemsize
    assert packed["w_txt"].shape == (D_txt, H)
    assert T > IHM_ROW, "heads read timesteps 23 and 47; need T >= 48"
    sub = 16 if itemsize == 2 else 8
    assert T % sub == 0, f"T must be a multiple of {sub} for in-kernel reshapes"

    if block_b is None:
        block_b = _pick_block_b(B, T)
    assert B % block_b == 0
    grid = (B // block_b,)

    # Layout change fused with the MXU downcast (single XLA op; half the HBM
    # write bytes when mxu_dtype is bf16).
    # TODO(synk): callers that already hold ts as (B, T, D_ts) should pass it
    # directly and skip this transpose altogether.
    ts_btd = jnp.transpose(ts, (1, 0, 2)).astype(mxu_dtype)
    texts_c = texts.astype(mxu_dtype)
    wmat = texts_weight_mat.astype(jnp.float32)

    w_bytes = (D_ts * H + D_txt * H + H * O_PAD) * itemsize + (H + O_PAD) * 4
    flops = 2 * B * (T * D_ts * H + N * D_txt * H + T * N * H + T * H * O_PAD)
    transcendentals = B * T * (H + O_PAD)
    bytes_accessed = ((ts.size + texts.size) * itemsize
                      + texts_weight_mat.size * 4 + w_bytes
                      + B * T * O_PAD * 4)

    # VMEM budget: double-buffered input/output blocks + weights, with
    # headroom; clamp to v7x's 64 MiB physical VMEM.
    blk_bytes = block_b * (T * D_ts * itemsize + N * D_txt * itemsize
                           + T * N * 4 + T * O_PAD * 4)
    vmem_limit = int(min(max(4 * (2 * blk_bytes + 2 * w_bytes), 32 << 20),
                         64 << 20))

    # TODO(synk): constant-index weight operands could be single-buffered
    # (pipeline_mode=pl.Buffered(1)) to free VMEM once H/block_b grow; for very
    # large T, shrink the (B, T, 128) slab to decomp-only plus an 8-row gather
    # of timesteps {23, 47, T-1} to cut HBM writeback ~3x.
    heads = pl.pallas_call(
        mm_mt_fused_kernel,
        out_shape=jax.ShapeDtypeStruct((B, T, O_PAD), jnp.float32),
        grid_spec=pltpu.PrefetchScalarGridSpec(
            num_scalar_prefetch=0,
            grid=grid,
            in_specs=[
                pl.BlockSpec((block_b, T, D_ts), lambda i: (i, 0, 0)),
                pl.BlockSpec((block_b, N, D_txt), lambda i: (i, 0, 0)),
                pl.BlockSpec((block_b, T, N), lambda i: (i, 0, 0)),
                pl.BlockSpec((D_ts, H), lambda i: (0, 0)),
                pl.BlockSpec((D_txt, H), lambda i: (0, 0)),
                pl.BlockSpec((1, H), lambda i: (0, 0)),
                pl.BlockSpec((H, O_PAD), lambda i: (0, 0)),
                pl.BlockSpec((1, O_PAD), lambda i: (0, 0)),
            ],
            out_specs=pl.BlockSpec((block_b, T, O_PAD), lambda i: (i, 0, 0)),
        ),
        compiler_params=pltpu.CompilerParams(
            dimension_semantics=("parallel",),
            vmem_limit_bytes=vmem_limit),
        cost_estimate=pl.CostEstimate(flops=int(flops),
                                      transcendentals=int(transcendentals),
                                      bytes_accessed=int(bytes_accessed)),
    )(ts_btd, texts_c, wmat,
      packed["w_ts"], packed["w_txt"], packed["b_enc"],
      packed["w_heads"], packed["b_heads"])

    # Split the packed head slab (cheap slices of a small array in the wrapper).
    o = HEAD_OFFSETS
    decomp_out = heads[:, :, o[0]:o[1]].reshape(B * T, HEAD_WIDTHS[0])
    los_out = heads[:, LOS_ROW, o[1]:o[2]]
    ihm_out = heads[:, IHM_ROW, o[2]:o[3]]
    pheno_out = heads[:, T - 1, o[3]:o[4]]
    readmit_out = heads[:, T - 1, o[4]:o[5]]
    ltm_out = heads[:, T - 1, o[5]:o[6]]
    return decomp_out, los_out, ihm_out, pheno_out, readmit_out, ltm_out


# -----------------------------------------------------------------------------
# Pure-JAX reference (same math, no Pallas) for a correctness check
# -----------------------------------------------------------------------------
def mm_mt_forward_ref(params, ts, texts, wmat):
    B = ts.shape[1]
    ts_btd = jnp.transpose(ts, (1, 0, 2))
    n_docs = texts.shape[1]
    text_spread = jnp.einsum("btn,bnd->btd", wmat, texts) / n_docs
    h = jnp.tanh(ts_btd @ params["w_ts"] + text_spread @ params["w_txt"]
                 + params["b_enc"])
    out = h.reshape(B * h.shape[1], -1)
    out_copy = out.reshape(B, -1, out.shape[1])

    def lin(x, w, b, sig):
        y = x @ w + b
        return jax.nn.sigmoid(y) if sig else y

    return (lin(out, params["w_decomp"], params["b_decomp"], True),
            lin(out_copy[:, 23, :], params["w_los"], params["b_los"], False),
            lin(out_copy[:, 47, :], params["w_ihm"], params["b_ihm"], True),
            lin(out_copy[:, -1, :], params["w_pheno"], params["b_pheno"], True),
            lin(out_copy[:, -1, :], params["w_readmit"], params["b_readmit"], True),
            lin(out_copy[:, -1, :], params["w_ltm"], params["b_ltm"], True))


if __name__ == "__main__":
    # Small shapes consistent with the forward pass (needs T >= 48 for index 47)
    B, T, D_TS, N_DOCS, D_TXT, H = 2, 48, 16, 4, 16, 32

    key = jax.random.PRNGKey(0)
    k = jax.random.split(key, 20)

    ts = jax.random.normal(k[0], (T, B, D_TS), jnp.float32)
    texts = jax.random.normal(k[1], (B, N_DOCS, D_TXT), jnp.float32)
    texts_weight_mat = jax.random.uniform(k[2], (B, T, N_DOCS), jnp.float32)

    def init_linear(kw, kb, fan_in, fan_out):
        s = 1.0 / jnp.sqrt(fan_in)
        w = jax.random.uniform(kw, (fan_in, fan_out), jnp.float32, -s, s)
        b = jax.random.uniform(kb, (1, fan_out), jnp.float32, -s, s)
        return w, b

    params = {}
    params["w_ts"], _ = init_linear(k[3], k[4], D_TS, H)
    params["w_txt"], params["b_enc"] = init_linear(k[5], k[6], D_TXT, H)
    params["w_decomp"], params["b_decomp"] = init_linear(k[7], k[8], H, 1)
    params["w_los"], params["b_los"] = init_linear(k[9], k[10], H, 10)
    params["w_ihm"], params["b_ihm"] = init_linear(k[11], k[12], H, 1)
    params["w_pheno"], params["b_pheno"] = init_linear(k[13], k[14], H, 25)
    params["w_readmit"], params["b_readmit"] = init_linear(k[15], k[16], H, 1)
    params["w_ltm"], params["b_ltm"] = init_linear(k[17], k[18], H, 1)

    refs = mm_mt_forward_ref(params, ts, texts, texts_weight_mat)

    # 1) f32 MXU path (tight tolerance).
    packed_f32 = pack_mm_mt_params(params, N_DOCS, mxu_dtype=jnp.float32)
    outs_f32 = jax.block_until_ready(
        jax.jit(mm_mt_forward)(packed_f32, ts, texts, texts_weight_mat))
    for o, r in zip(outs_f32, refs):
        assert o.shape == r.shape, (o.shape, r.shape)
        assert jnp.allclose(o, r, atol=1e-4, rtol=1e-4), float(
            jnp.max(jnp.abs(o - r)))

    # 2) bf16 MXU operands with f32 accumulation (fast path on v5e/v6e/v7x).
    packed_bf16 = pack_mm_mt_params(params, N_DOCS, mxu_dtype=jnp.bfloat16)
    outs_bf16 = jax.block_until_ready(
        jax.jit(mm_mt_forward)(packed_bf16, ts, texts, texts_weight_mat))
    for o, r in zip(outs_bf16, refs):
        assert o.shape == r.shape, (o.shape, r.shape)
        assert jnp.allclose(o, r, atol=2e-2, rtol=2e-2), float(
            jnp.max(jnp.abs(o - r)))

    print("KERNEL_OK")
</pallas_src>

<mosaic_0001>
module attributes {stable_mosaic.version = 11 : i64} {
  func.func @mm_mt_fused_kernel(%arg0: i32, %arg1: memref<1x48x16xf32, #tpu.memory_space<vmem>>, %arg2: memref<1x4x16xf32, #tpu.memory_space<vmem>>, %arg3: memref<1x48x4xf32, #tpu.memory_space<vmem>>, %arg4: memref<16x32xf32, #tpu.memory_space<vmem>>, %arg5: memref<16x32xf32, #tpu.memory_space<vmem>>, %arg6: memref<1x32xf32, #tpu.memory_space<vmem>>, %arg7: memref<32x128xf32, #tpu.memory_space<vmem>>, %arg8: memref<1x128xf32, #tpu.memory_space<vmem>>, %arg9: memref<1x48x128xf32, #tpu.memory_space<vmem>>) attributes {dimension_semantics = [#tpu.dimension_semantics<parallel>], iteration_bounds = array<i64: 2>, scalar_prefetch = 0 : i64, scratch_operands = 0 : i64, tpu.core_type = #tpu.core_type<tc>, window_params = [{transform_indices = @transform_0, window_bounds = array<i64: 1, 48, 16>}, {transform_indices = @transform_1, window_bounds = array<i64: 1, 4, 16>}, {transform_indices = @transform_2, window_bounds = array<i64: 1, 48, 4>}, {pipeline_mode = #tpu.pipeline_mode<synchronous>, transform_indices = @transform_3, window_bounds = array<i64: 16, 32>}, {pipeline_mode = #tpu.pipeline_mode<synchronous>, transform_indices = @transform_4, window_bounds = array<i64: 16, 32>}, {pipeline_mode = #tpu.pipeline_mode<synchronous>, transform_indices = @transform_5, window_bounds = array<i64: 1, 32>}, {pipeline_mode = #tpu.pipeline_mode<synchronous>, transform_indices = @transform_6, window_bounds = array<i64: 32, 128>}, {pipeline_mode = #tpu.pipeline_mode<synchronous>, transform_indices = @transform_7, window_bounds = array<i64: 1, 128>}, {transform_indices = @transform_8, window_bounds = array<i64: 1, 48, 128>}]} {
    %c0 = arith.constant 0 : index
    %c0_0 = arith.constant 0 : index
    %c0_1 = arith.constant 0 : index
    %0 = vector.load %arg1[%c0, %c0_0, %c0_1] : memref<1x48x16xf32, #tpu.memory_space<vmem>>, vector<1x48x16xf32>
    %1 = vector.shape_cast %0 : vector<1x48x16xf32> to vector<48x16xf32>
    %c0_2 = arith.constant 0 : index
    %c0_3 = arith.constant 0 : index
    %2 = vector.load %arg4[%c0_2, %c0_3] : memref<16x32xf32, #tpu.memory_space<vmem>>, vector<16x32xf32>
    %cst = arith.constant dense<0.000000e+00> : vector<48x32xf32>
    %3 = tpu.matmul %1, %2, %cst {dimension_numbers = #tpu.dot_dimension_numbers<[1], [0], [0], [1], [0, 0, 1, 1], [], []>} : vector<48x16xf32>, vector<16x32xf32>, vector<48x32xf32> -> vector<48x32xf32>
    %4 = vector.shape_cast %3 : vector<48x32xf32> to vector<1x48x32xf32>
    %c0_4 = arith.constant 0 : index
    %c0_5 = arith.constant 0 : index
    %5 = vector.load %arg6[%c0_4, %c0_5] : memref<1x32xf32, #tpu.memory_space<vmem>>, vector<1x32xf32>
    %6 = vector.shape_cast %5 : vector<1x32xf32> to vector<1x1x32xf32>
    %7 = vector.broadcast %6 : vector<1x1x32xf32> to vector<1x48x32xf32>
    %8 = arith.addf %4, %7 : vector<1x48x32xf32>
    %c0_6 = arith.constant 0 : index
    %c0_7 = arith.constant 0 : index
    %c0_8 = arith.constant 0 : index
    %9 = vector.load %arg3[%c0_6, %c0_7, %c0_8] : memref<1x48x4xf32, #tpu.memory_space<vmem>>, vector<1x48x4xf32>
    %c0_9 = arith.constant 0 : index
    %c0_10 = arith.constant 0 : index
    %c0_11 = arith.constant 0 : index
    %10 = vector.load %arg2[%c0_9, %c0_10, %c0_11] : memref<1x4x16xf32, #tpu.memory_space<vmem>>, vector<1x4x16xf32>
    %11 = vector.shape_cast %10 : vector<1x4x16xf32> to vector<4x16xf32>
    %c0_12 = arith.constant 0 : index
    %c0_13 = arith.constant 0 : index
    %12 = vector.load %arg5[%c0_12, %c0_13] : memref<16x32xf32, #tpu.memory_space<vmem>>, vector<16x32xf32>
    %cst_14 = arith.constant dense<0.000000e+00> : vector<4x32xf32>
    %13 = tpu.matmul %11, %12, %cst_14 {dimension_numbers = #tpu.dot_dimension_numbers<[1], [0], [0], [1], [0, 0, 1, 1], [], []>} : vector<4x16xf32>, vector<16x32xf32>, vector<4x32xf32> -> vector<4x32xf32>
    %14 = vector.shape_cast %13 : vector<4x32xf32> to vector<1x4x32xf32>
    %15 = vector.extract_strided_slice %9 {offsets = [0, 0, 0], sizes = [1, 48, 1], strides = [1, 1, 1]} : vector<1x48x4xf32> to vector<1x48x1xf32>
    %16 = vector.extract_strided_slice %14 {offsets = [0, 0, 0], sizes = [1, 1, 32], strides = [1, 1, 1]} : vector<1x4x32xf32> to vector<1x1x32xf32>
    %17 = vector.broadcast %15 : vector<1x48x1xf32> to vector<1x48x32xf32>
    %18 = vector.broadcast %16 : vector<1x1x32xf32> to vector<1x48x32xf32>
    %19 = arith.mulf %17, %18 : vector<1x48x32xf32>
    %20 = arith.addf %8, %19 : vector<1x48x32xf32>
    %21 = vector.extract_strided_slice %9 {offsets = [0, 0, 1], sizes = [1, 48, 1], strides = [1, 1, 1]} : vector<1x48x4xf32> to vector<1x48x1xf32>
    %22 = vector.extract_strided_slice %14 {offsets = [0, 1, 0], sizes = [1, 1, 32], strides = [1, 1, 1]} : vector<1x4x32xf32> to vector<1x1x32xf32>
    %23 = vector.broadcast %21 : vector<1x48x1xf32> to vector<1x48x32xf32>
    %24 = vector.broadcast %22 : vector<1x1x32xf32> to vector<1x48x32xf32>
    %25 = arith.mulf %23, %24 : vector<1x48x32xf32>
    %26 = arith.addf %20, %25 : vector<1x48x32xf32>
    %27 = vector.extract_strided_slice %9 {offsets = [0, 0, 2], sizes = [1, 48, 1], strides = [1, 1, 1]} : vector<1x48x4xf32> to vector<1x48x1xf32>
    %28 = vector.extract_strided_slice %14 {offsets = [0, 2, 0], sizes = [1, 1, 32], strides = [1, 1, 1]} : vector<1x4x32xf32> to vector<1x1x32xf32>
    %29 = vector.broadcast %27 : vector<1x48x1xf32> to vector<1x48x32xf32>
    %30 = vector.broadcast %28 : vector<1x1x32xf32> to vector<1x48x32xf32>
    %31 = arith.mulf %29, %30 : vector<1x48x32xf32>
    %32 = arith.addf %26, %31 : vector<1x48x32xf32>
    %33 = vector.extract_strided_slice %9 {offsets = [0, 0, 3], sizes = [1, 48, 1], strides = [1, 1, 1]} : vector<1x48x4xf32> to vector<1x48x1xf32>
    %34 = vector.extract_strided_slice %14 {offsets = [0, 3, 0], sizes = [1, 1, 32], strides = [1, 1, 1]} : vector<1x4x32xf32> to vector<1x1x32xf32>
    %35 = vector.broadcast %33 : vector<1x48x1xf32> to vector<1x48x32xf32>
    %36 = vector.broadcast %34 : vector<1x1x32xf32> to vector<1x48x32xf32>
    %37 = arith.mulf %35, %36 : vector<1x48x32xf32>
    %38 = arith.addf %32, %37 : vector<1x48x32xf32>
    %39 = math.tanh %38 : vector<1x48x32xf32>
    %40 = vector.shape_cast %39 : vector<1x48x32xf32> to vector<48x32xf32>
    %c0_15 = arith.constant 0 : index
    %c0_16 = arith.constant 0 : index
    %41 = vector.load %arg7[%c0_15, %c0_16] : memref<32x128xf32, #tpu.memory_space<vmem>>, vector<32x128xf32>
    %cst_17 = arith.constant dense<0.000000e+00> : vector<48x128xf32>
    %42 = tpu.matmul %40, %41, %cst_17 {dimension_numbers = #tpu.dot_dimension_numbers<[1], [0], [0], [1], [0, 0, 1, 1], [], []>} : vector<48x32xf32>, vector<32x128xf32>, vector<48x128xf32> -> vector<48x128xf32>
    %c0_18 = arith.constant 0 : index
    %c0_19 = arith.constant 0 : index
    %43 = vector.load %arg8[%c0_18, %c0_19] : memref<1x128xf32, #tpu.memory_space<vmem>>, vector<1x128xf32>
    %44 = vector.broadcast %43 : vector<1x128xf32> to vector<48x128xf32>
    %45 = arith.addf %42, %44 : vector<48x128xf32>
    %46 = tpu.iota {dimensions = array<i32: 1>} : vector<48x128xi32>
    %c1_i32 = arith.constant 1 : i32
    %47 = vector.broadcast %c1_i32 : i32 to vector<48x128xi32>
    %48 = arith.cmpi sge, %46, %47 : vector<48x128xi32>
    %c11_i32 = arith.constant 11 : i32
    %49 = vector.broadcast %c11_i32 : i32 to vector<48x128xi32>
    %50 = arith.cmpi slt, %46, %49 : vector<48x128xi32>
    %51 = arith.andi %48, %50 : vector<48x128xi1>
    %52 = arith.negf %45 : vector<48x128xf32>
    %53 = math.exp %52 : vector<48x128xf32>
    %cst_20 = arith.constant 1.000000e+00 : f32
    %54 = vector.broadcast %cst_20 : f32 to vector<48x128xf32>
    %55 = arith.addf %54, %53 : vector<48x128xf32>
    %56 = arith.divf %54, %55 : vector<48x128xf32>
    %57 = arith.select %51, %45, %56 : vector<48x128xi1>, vector<48x128xf32>
    %58 = vector.shape_cast %57 : vector<48x128xf32> to vector<1x48x128xf32>
    %c0_21 = arith.constant 0 : index
    %c0_22 = arith.constant 0 : index
    %c0_23 = arith.constant 0 : index
    %59 = vector.load %arg9[%c0_21, %c0_22, %c0_23] : memref<1x48x128xf32, #tpu.memory_space<vmem>>, vector<1x48x128xf32>
    tpu.vector_store %arg9[%c0_21, %c0_22, %c0_23], %58 {strides = array<i32>} : memref<1x48x128xf32, #tpu.memory_space<vmem>>, vector<1x48x128xf32>,
    return
  }
  func.func @transform_0(%arg0: i32) -> (i32, i32, i32) {
    %c0_i32 = arith.constant 0 : i32
    %c0_i32_0 = arith.constant 0 : i32
    %c0_i32_1 = arith.constant 0 : i32
    return %arg0, %c0_i32, %c0_i32_0 : i32, i32, i32
  }
  func.func @transform_1(%arg0: i32) -> (i32, i32, i32) {
    %c0_i32 = arith.constant 0 : i32
    %c0_i32_0 = arith.constant 0 : i32
    %c0_i32_1 = arith.constant 0 : i32
    return %arg0, %c0_i32, %c0_i32_0 : i32, i32, i32
  }
  func.func @transform_2(%arg0: i32) -> (i32, i32, i32) {
    %c0_i32 = arith.constant 0 : i32
    %c0_i32_0 = arith.constant 0 : i32
    %c0_i32_1 = arith.constant 0 : i32
    return %arg0, %c0_i32, %c0_i32_0 : i32, i32, i32
  }
  func.func @transform_3(%arg0: i32) -> (i32, i32) {
    %c0_i32 = arith.constant 0 : i32
    %c0_i32_0 = arith.constant 0 : i32
    %c0_i32_1 = arith.constant 0 : i32
    return %c0_i32, %c0_i32_0 : i32, i32
  }
  func.func @transform_4(%arg0: i32) -> (i32, i32) {
    %c0_i32 = arith.constant 0 : i32
    %c0_i32_0 = arith.constant 0 : i32
    %c0_i32_1 = arith.constant 0 : i32
    return %c0_i32, %c0_i32_0 : i32, i32
  }
  func.func @transform_5(%arg0: i32) -> (i32, i32) {
    %c0_i32 = arith.constant 0 : i32
    %c0_i32_0 = arith.constant 0 : i32
    %c0_i32_1 = arith.constant 0 : i32
    return %c0_i32, %c0_i32_0 : i32, i32
  }
  func.func @transform_6(%arg0: i32) -> (i32, i32) {
    %c0_i32 = arith.constant 0 : i32
    %c0_i32_0 = arith.constant 0 : i32
    %c0_i32_1 = arith.constant 0 : i32
    return %c0_i32, %c0_i32_0 : i32, i32
  }
  func.func @transform_7(%arg0: i32) -> (i32, i32) {
    %c0_i32 = arith.constant 0 : i32
    %c0_i32_0 = arith.constant 0 : i32
    %c0_i32_1 = arith.constant 0 : i32
    return %c0_i32, %c0_i32_0 : i32, i32
  }
  func.func @transform_8(%arg0: i32) -> (i32, i32, i32) {
    %c0_i32 = arith.constant 0 : i32
    %c0_i32_0 = arith.constant 0 : i32
    %c0_i32_1 = arith.constant 0 : i32
    return %arg0, %c0_i32, %c0_i32_0 : i32, i32, i32
  }
}

</mosaic_0001>

<bundles_post_ra>
// kernel: mm_mt_forward.1
= control target key start
LH: loop header
LB: loop body
LE: loop exit
PB: predicated region body
PF: predicated region fallthrough
CT: control target
= control target key end

     0   :  { %s1222_s27 = smov 0   ;;  %s1333_s0 = inlined_call_operand.vmem [shape: f32[2,48,16], index: 0, kind: input, shape index: {}]   ;;  %s1334_s1 = inlined_call_operand.vmem [shape: f32[2,4,16], index: 1, kind: input, shape index: {}]   ;;  %s1335_s2 = inlined_call_operand.vmem [shape: f32[2,48,4], index: 2, kind: input, shape index: {}]   ;;  %s1336_s3 = inlined_call_operand.vmem [shape: f32[16,32], index: 3, kind: input, shape index: {}]   ;;  %s1337_s4 = inlined_call_operand.vmem [shape: f32[16,32], index: 4, kind: input, shape index: {}]   ;;  %s1338_s5 = inlined_call_operand.vmem [shape: f32[1,32], index: 5, kind: input, shape index: {}]   ;;  %s1339_s6 = inlined_call_operand.vmem [shape: f32[32,128], index: 6, kind: input, shape index: {}]   ;;  %s1340_s7 = inlined_call_operand.vmem [shape: f32[1,128], index: 7, kind: input, shape index: {}]   ;;  %s1341_s8 = inlined_call_operand.vmem [shape: f32[2,48,128], index: 8, kind: output, shape index: {}]  }
   0x1 LB: > { %s989_s28 = sadd.s32 4294967295, %s1168_s27   ;;  %p993_p0 = scmp.ge.s32.totalorder %s1168_s27, 1  ;;  %s1168_s27 = sphi %s1222_s27, %s18_s27  }
   0x2   : > { %p281_p1 = scmp.lt.s32.totalorder %s1168_s27, 3 }
   0x4   : > { %p282_p2 = pnand %p993_p0, %p281_p1 }
   0x5   : > { %v349_v0 = vld [vmem:[%s1336_s3] sm:$0xff] (!%p282_p2)  ;;  %v350_v1 = vld [vmem:[%s1336_s3 + $0x8] sm:$0xff] (!%p282_p2)  ;;  %p324_p3 = scmp.lt.s32.totalorder (!%p282_p2), %s989_s28, 1  ;;  %v1170_v3 = vmov (!%p282_p2), 1   ;;  %v1171_v6 = vmov (!%p282_p2), 0   ;;  %vm351_vm0 = vcmask (!%p282_p2), 130048   ;;  %v590_v49 = vlaneseq (!%p282_p2) }
   0x6   : > { %285 = sbr.rel (%p282_p2) target bundleno = 525 (0x20d), region = 52  ;;  %v1079_v2 = vpack.c.bf16 (!%p282_p2), %v350_v1, %v349_v0  ;;  %1111 = vset.pattern.permute.xlu1 (!%p282_p2), %v1170_v3  ;;  %v485_v4 = vld [vmem:[%s1337_s4] sm:$0xff] (!%p282_p2)  ;;  %v486_v5 = vld [vmem:[%s1337_s4 + $0x8] sm:$0xff] (!%p282_p2)  ;;  %1110 = vset.pattern.permute.xlu0 (!%p282_p2), %v1171_v6  ;;  %v1172_v7 = vmov (!%p282_p2), 0.0|0.0   ;;  %vm1173_vm1 = vmmov (!%p282_p2), 0   ;;  %v1174_v18 = vmov (!%p282_p2), 0.0  }
   0x7   : > { %v1084_v8 = vpack.c.bf16 (!%p282_p2), %v486_v5, %v485_v4  ;;  %v1175_v20 = vmov (!%p282_p2), 2   ;;  %v1176_v21 = vmov (!%p282_p2), 3   ;;  %v732_v25 = vld [vmem:[%s1339_s6] sm:$0xff] (!%p282_p2)  ;;  %v733_v26 = vld [vmem:[%s1339_s6 + $0x8] sm:$0xff] (!%p282_p2)  ;;  %v734_v27 = vld [vmem:[%s1339_s6 + $0x10] sm:$0xff] (!%p282_p2)  ;;  %v591_v54 = vshrl.u32 (!%p282_p2), %v590_v49, 7 }
   0x8   : > { %1080 = vmatprep.subr.bf16.mxu0 (!%p282_p2), %v1079_v2  ;;  %v1086_v28 = vpack.c.bf16 (!%p282_p2), %v733_v26, %v732_v25  ;;  %v735_v29 = vld [vmem:[%s1339_s6 + $0x18] sm:$0xff] (!%p282_p2)  ;;  %v1004_v60 = vld [vmem:[%s1338_s5] ss:$0 sm:$0xff] (!%p282_p2)  ;;  %vm743_vm2 = vcmask (!%p282_p2), 261120  }
   0x9   : > { %1082 = vmatpush3.bf16.msra.mxu0 (!%p282_p2), %v1079_v2  ;;  %v1090_v30 = vpack.c.bf16 (!%p282_p2), %v735_v29, %v734_v27  ;;  %v592_v58 = vsub.s32 (!%p282_p2), 0, %v591_v54  ;;  %v632_v59 = vsub.s32 (!%p282_p2), 1, %v591_v54  ;;  %v672_v61 = vsub.s32 (!%p282_p2), 2, %v591_v54 }
   0xa   : > { %1083 = vmatprep.subr.bf16.mxu0 (!%p282_p2), %v1172_v7  ;;  %1087 = vmatprep.subr.bf16.mxu1 (!%p282_p2), %v1086_v28  ;;  %v712_v63 = vsub.s32 (!%p282_p2), 3, %v591_v54 }
   0xb   : > { %1089 = vmatpush3.bf16.msra.mxu1 (!%p282_p2), %v1086_v28 }
   0xc   : > { %1091 = vmatprep.subr.bf16.mxu1 (!%p282_p2), %v1090_v30 }
   0xd   : > { %s1345_s28 = smov (!%p324_p3, %s989_s28), 1 }
   0xe   : > { %s1246_s15 = smul.u32 48, %s1345_s28  ;;  %s995_s22 = sshll.u32 %s1345_s28, 2 }
   0xf   : > { %s332_s25 = scalar_lea.vmem %s1334_s1, %s995_s22  ;;  %1093 = vmatpush3.bf16.msra.mxu1 %v1090_v30 }
  0x10   : > { %s328_s18 = scalar_lea.vmem %s1333_s0, %s1246_s15  ;;  %s1256_s21 = scalar_lea.vmem %s1335_s2, %s1246_s15  ;;  %v484_v19 = vld [vmem:[%s332_s25] sm:$0xf] }
  0x11   : > { %v343_v9 = vld [vmem:[%s328_s18] sm:$0xff]  ;;  %v344_v10 = vld [vmem:[%s328_s18 + $0x8] sm:$0xff]  ;;  %v345_v11 = vld [vmem:[%s328_s18 + $0x10] sm:$0xff]  ;;  %s342_s20 = scalar_lea.vmem %s1341_s8, %s1246_s15 }
  0x12   : > { %1046 = vmatprep.mubr.msk.f32.mxu0 %vm351_vm0, %v343_v9  ;;  %v478_v12 = vld [vmem:[%s1256_s21] sm:$0xff]  ;;  %v346_v13 = vld [vmem:[%s328_s18 + $0x18] sm:$0xff]  ;;  %v479_v15 = vld [vmem:[%s1256_s21 + $0x8] sm:$0xff] }
  0x13   : > { %1047 = vmatmul.mubr.msk.f32.vlgmr.msra.gmra.mrb[0].mxu0 %vm351_vm0, %v344_v10  ;;  %v347_v14 = vld [vmem:[%s328_s18 + $0x20] sm:$0xff]  ;;  %607 = vperm.xlu1 %1111, %v478_v12   ;;  %v480_v16 = vld [vmem:[%s1256_s21 + $0x10] sm:$0xff]  ;;  %v348_v17 = vld [vmem:[%s328_s18 + $0x28] sm:$0xff] }
  0x14   : > { %1085 = vmatpush3.bf16.msra.mxu0 %v1084_v8  ;;  %1049 = vmatprep.mubr.msk.f32.mxu0 %vm351_vm0, %v345_v11  ;;  %v481_v22 = vld [vmem:[%s1256_s21 + $0x18] sm:$0xff]  ;;  %v483_v23 = vld [vmem:[%s1256_s21 + $0x28] sm:$0xff]  ;;  %v482_v24 = vld [vmem:[%s1256_s21 + $0x20] sm:$0xff] }
  0x15   : > { %562 = vperm.xlu0 %1110, %v478_v12  }
  0x17   : > { %1050 = vmatmul.mubr.msk.f32.gmra.mrb[2].mxu0 %vm351_vm0, %v346_v13  ;;  %611 = vperm.xlu1 %1111, %v479_v15  }
  0x18   : > { %1052 = vmatprep.mubr.msk.f32.mxu0 %vm351_vm0, %v347_v14 }
  0x19   : > { %1113 = vset.pattern.permute.xlu0 %v1170_v3 }
  0x1a   : > { %615 = vperm.xlu0 %1113, %v480_v16  }
  0x1b   : > { %1053 = vmatmul.mubr.msk.f32.gmra.mrb[4].mxu0 %vm351_vm0, %v348_v17  ;;  %1112 = vset.pattern.permute.xlu1 %v1175_v20 }
  0x1c   : > { %1059 = vmatprep.mubr.msk.f32.mxu0 %vm1173_vm1, %v1174_v18  ;;  %647 = vperm.xlu1 %1112, %v478_v12  }
  0x1e   : > { %1114 = vset.pattern.permute.xlu0 %v1171_v6 }
  0x1f   : > { %1060 = vmatmul.mubr.msk.f32.vlgmr.msra.gmra.mrb[6].mxu0 %vm351_vm0, %v484_v19  ;;  %567 = vperm.xlu0 %1114, %v479_v15  }
  0x20   : > { %651 = vperm.xlu1 %1112, %v479_v15  }
  0x23   : > { %572 = vperm.xlu0 %1114, %v480_v16  }
  0x24   : > { %1115 = vset.pattern.permute.xlu1 %v1176_v21 }
  0x25   : > { %687 = vperm.xlu1 %1115, %v478_v12  }
  0x27   : > { %577 = vperm.xlu0 %1114, %v481_v22  }
  0x29   : > { %1116 = vset.pattern.permute.xlu1 %v1170_v3 }
  0x2a   : > { %619 = vperm.xlu1 %1116, %v481_v22  }
  0x2b   : > { %587 = vperm.xlu0 %1114, %v483_v23  }
  0x2e   : > { %1117 = vset.pattern.permute.xlu1 %v1171_v6 }
  0x2f   : > { %1119 = vset.pattern.permute.xlu0 %v1176_v21  ;;  %582 = vperm.xlu1 %1117, %v482_v24  }
  0x30   : > { %691 = vperm.xlu0 %1119, %v479_v15  }
  0x33   : > { %1118 = vset.pattern.permute.xlu1 %v1175_v20 }
  0x34   : > { %695 = vperm.xlu0 %1119, %v480_v16   ;;  %655 = vperm.xlu1 %1118, %v480_v16  }
  0x38   : > { %1122 = vset.pattern.permute.xlu0 %v1175_v20  ;;  %659 = vperm.xlu1 %1118, %v481_v22  }
  0x39   : > { %663 = vperm.xlu0 %1122, %v482_v24  }
  0x3c   : > { %1120 = vset.pattern.permute.xlu1 %v1170_v3 }
  0x3d   : > { %1125 = vset.pattern.permute.xlu0 %v1176_v21  ;;  %623 = vperm.xlu1 %1120, %v482_v24  }
  0x3e   : > { %707 = vperm.xlu0 %1125, %v483_v23  }
  0x41   : > { %627 = vperm.xlu1 %1120, %v483_v23  }
  0x45   : > { %1121 = vset.pattern.permute.xlu1 %v1176_v21 }
  0x46   : > { %699 = vperm.xlu1 %1121, %v481_v22  }
  0x4a   : > { %1123 = vset.pattern.permute.xlu1 %v1175_v20 }
  0x4b   : > { %667 = vperm.xlu1 %1123, %v483_v23  }
  0x4f   : > { %1124 = vset.pattern.permute.xlu1 %v1176_v21 }
  0x50   : > { %703 = vperm.xlu1 %1124, %v482_v24  }
  0x92   : > { %v1290_v31 = vpop.permute.xlu1 %607 }
  0x94   : > { %v1296_v36 = vpop.permute.xlu0 %562 }
  0x96   : > { %v612_v32 = vpop.permute.xlu1 %611 }
  0x99   : > { %v616_v38 = vpop.permute.xlu0 %615 }
  0x9b   : > { %v1292_v33 = vpop.permute.xlu1 %647 }
  0x9e   : > { %v568_v40 = vpop.permute.xlu0 %567 }
  0x9f   : > { %v652_v34 = vpop.permute.xlu1 %651 }
  0xa2   : > { %v573_v42 = vpop.permute.xlu0 %572 }
  0xa4   : > { %v1294_v35 = vpop.permute.xlu1 %687 }
  0xa6   : > { %v578_v44 = vpop.permute.xlu0 %577 }
  0xa9   : > { %v620_v37 = vpop.permute.xlu1 %619 }
  0xaa   : > { %v588_v46 = vpop.permute.xlu0 %587 }
  0xae   : > { %v583_v39 = vpop.permute.xlu1 %582 }
  0xaf   : > { %v692_v52 = vpop.permute.xlu0 %691 }
  0xb3   : > { %v656_v41 = vpop.permute.xlu1 %655  ;;  %v696_v62 = vpop.permute.xlu0 %695 }
  0xb7   : > { %v660_v43 = vpop.permute.xlu1 %659 }
  0xb8   : > { %v664_v18 = vpop.permute.xlu0 %663 }
  0xbc   : > { %v624_v45 = vpop.permute.xlu1 %623 }
  0xc0   : > { %v628_v50 = vpop.permute.xlu1 %627 }
  0xc5   : > { %v700_v56 = vpop.permute.xlu1 %699 }
  0xca   : > { %v668_v9 = vpop.permute.xlu1 %667 }
  0xe6   : > { %v1048_v47 = vpop.f32.mrb[0].mxu0 }
  0xe7   : > { %v436_v48 = vpop.f32.mrb[1].mxu0  ;;  %v473_v1 = vadd.f32 %v1048_v47, %v1004_v60 }
  0xe8   : > { %v472_v5 = vadd.f32 %v1004_v60, %v436_v48 }
  0xea   : > { %v1051_v51 = vpop.f32.mrb[2].mxu0 }
  0xeb   : > { %v446_v53 = vpop.f32.mrb[3].mxu0  ;;  %v475_v6 = vadd.f32 %v1051_v51, %v1004_v60 }
  0xec   : > { %v474_v7 = vadd.f32 %v1004_v60, %v446_v53  ;;  %v704_v53 = vpop.permute.xlu1 %703 }
  0xee   : > { %v1054_v55 = vpop.f32.mrb[4].mxu0 }
  0xef   : > { %v456_v57 = vpop.f32.mrb[5].mxu0  ;;  %v477_v14 = vadd.f32 %v1054_v55, %v1004_v60 }
  0xf0   : > { %v476_v15 = vadd.f32 %v1004_v60, %v456_v57  ;;  %v708_v57 = vpop.permute.xlu0 %707 }
  0xf2   : > { %v556_v0 = vpop.f32.mrb[6].mxu0 }
  0xf3   : > { %v593_v2 = vrot.slane %v556_v0, %v592_v58  ;;  %v633_v3 = vrot.slane %v556_v0, %v632_v59  ;;  %v1061_v4 = vpop.f32.mrb[7].mxu0  ;;  %v673_v8 = vrot.slane %v556_v0, %v672_v61  ;;  %v713_v13 = vrot.slane %v556_v0, %v712_v63 }
  0xf5   : > { %v595_v10 = vmul.f32 %v593_v2, %v568_v40  ;;  %v596_v11 = vmul.f32 %v593_v2, %v573_v42  ;;  %v597_v12 = vmul.f32 %v593_v2, %v578_v44  ;;  %v635_v16 = vmul.f32 %v633_v3, %v612_v32 }
  0xf6   : > { %v636_v17 = vmul.f32 %v633_v3, %v616_v38  ;;  %v637_v22 = vmul.f32 %v633_v3, %v620_v37  ;;  %v675_v23 = vmul.f32 %v673_v8, %v652_v34  ;;  %v676_v24 = vmul.f32 %v673_v8, %v656_v41 }
  0xf7   : > { %v601_v19 = vadd.f32 %v595_v10, %v473_v1  ;;  %v602_v20 = vadd.f32 %v596_v11, %v474_v7  ;;  %v603_v21 = vadd.f32 %v597_v12, %v475_v6  ;;  %v677_v25 = vmul.f32 %v673_v8, %v660_v43 }
  0xf8   : > { %v598_v26 = vmul.f32 %v593_v2, %v583_v39  ;;  %v715_v30 = vmul.f32 %v713_v13, %v692_v52  ;;  %v716_v40 = vmul.f32 %v713_v13, %v696_v62  ;;  %v638_v44 = vmul.f32 %v633_v3, %v624_v45 }
  0xf9   : > { %v641_v27 = vadd.f32 %v635_v16, %v601_v19  ;;  %v642_v28 = vadd.f32 %v636_v17, %v602_v20  ;;  %v643_v29 = vadd.f32 %v637_v22, %v603_v21  ;;  %v599_v47 = vmul.f32 %v593_v2, %v588_v46 }
  0xfa   : > { %v604_v42 = vadd.f32 %v598_v26, %v476_v15  ;;  %v717_v51 = vmul.f32 %v713_v13, %v700_v56  ;;  %v678_v55 = vmul.f32 %v673_v8, %v664_v18  ;;  %v639_v34 = vmul.f32 %v633_v3, %v628_v50 }
  0xfb   : > { %v681_v48 = vadd.f32 %v675_v23, %v641_v27  ;;  %v682_v32 = vadd.f32 %v676_v24, %v642_v28  ;;  %v683_v38 = vadd.f32 %v677_v25, %v643_v29  ;;  %v605_v37 = vadd.f32 %v599_v47, %v477_v14 }
  0xfc   : > { %v644_v54 = vadd.f32 %v638_v44, %v604_v42  ;;  %v594_v58 = vmul.f32 %v593_v2, %v1296_v36  ;;  %v718_v59 = vmul.f32 %v713_v13, %v704_v53  ;;  %v679_v45 = vmul.f32 %v673_v8, %v668_v9 }
  0xfd   : > { %v721_v41 = vadd.f32 %v715_v30, %v681_v48  ;;  %v722_v43 = vadd.f32 %v716_v40, %v682_v32  ;;  %v723_v39 = vadd.f32 %v717_v51, %v683_v38  ;;  %v645_v60 = vadd.f32 %v639_v34, %v605_v37 }
  0xfe   : > { %v684_v52 = vadd.f32 %v678_v55, %v644_v54  ;;  %v600_v46 = vadd.f32 %v594_v58, %v472_v5  ;;  %v634_v61 = vmul.f32 %v633_v3, %v1290_v31  ;;  %v719_v63 = vmul.f32 %v713_v13, %v708_v57 }
  0xff   : > { %v685_v56 = vadd.f32 %v679_v45, %v645_v60  ;;  %v674_v1 = vmul.f32 %v673_v8, %v1292_v33  ;;  %v714_v6 = vmul.f32 %v713_v13, %v1294_v35  ;;  %1126 = vtanh.f32 %v721_v41  ;;  %v1006_v35 = vld [vmem:[%s1340_s7] ss:$0 sm:$0xff] }
 0x100   : > { %v724_v62 = vadd.f32 %v718_v59, %v684_v52  ;;  %v640_v0 = vadd.f32 %v634_v61, %v600_v46  ;;  %v858_v40 = vand.u32 127, %v590_v49 }
 0x101   : > { %v725_v50 = vadd.f32 %v719_v63, %v685_v56 }
 0x102   : > { %v680_v4 = vadd.f32 %v674_v1, %v640_v0  ;;  %vm859_vm3 = vcmp.ge.s32.totalorder %v858_v40, 1  ;;  %vm860_vm4 = vcmp.lt.s32.totalorder %v858_v40, 11 }
 0x103   : > { %vm1310_vm5 = vmand %vm859_vm3, %vm860_vm4 }
 0x104   : > { %v720_v7 = vadd.f32 %v714_v6, %v680_v4 }
 0x106   : > { %1128 = vtanh.f32 %v720_v7 }
 0x107   : > { %1130 = vtanh.f32 %v722_v43 }
 0x108   : > { %1132 = vtanh.f32 %v723_v39 }
 0x109   : > { %1134 = vtanh.f32 %v724_v62  ;;  %v1127_v36 = vpop.eup %1126 }
 0x10a   : > { %1136 = vtanh.f32 %v725_v50 }
 0x110   : > { %v1129_v31 = vpop.eup %1128 }
 0x111   : > { %1070 = vmatprep.mubr.msk.f32.mxu1 %vm743_vm2, %v1129_v31  ;;  %v1131_v2 = vpop.eup %1130 }
 0x112   : > { %1071 = vmatmul.mubr.msk.f32.vlgmr.msra.gmra.mrb[0].mxu1 %vm743_vm2, %v1127_v36  ;;  %v1133_v3 = vpop.eup %1132 }
 0x113   : > { %1073 = vmatprep.mubr.msk.f32.mxu1 %vm743_vm2, %v1131_v2  ;;  %v1135_v33 = vpop.eup %1134 }
 0x114   : > { %v1137_v5 = vpop.eup %1136 }
 0x116   : > { %1074 = vmatmul.mubr.msk.f32.gmra.mrb[2].mxu1 %vm743_vm2, %v1133_v3 }
 0x117   : > { %1076 = vmatprep.mubr.msk.f32.mxu1 %vm743_vm2, %v1135_v33 }
 0x11a   : > { %1077 = vmatmul.mubr.msk.f32.gmra.mrb[4].mxu1 %vm743_vm2, %v1137_v5 }
 0x1e5   : > { %v1072_v8 = vpop.f32.mrb[0].mxu1 }
 0x1e6   : > { %v834_v9 = vadd.f32 %v1072_v8, %v1006_v35  ;;  %v828_v10 = vpop.f32.mrb[1].mxu1 }
 0x1e7   : > { %v829_v11 = vadd.f32 %v1006_v35, %v828_v10 }
 0x1e8   : > { %v1014_v12 = vmul.f32 -1.442695, %v834_v9 }
 0x1e9   : > { %v1013_v13 = vmul.f32 -1.442695, %v829_v11  ;;  %v1075_v14 = vpop.f32.mrb[2].mxu1 }
 0x1ea   : > { %1138 = vpow2.f32 %v1014_v12  ;;  %v844_v15 = vadd.f32 %v1075_v14, %v1006_v35  ;;  %v838_v16 = vpop.f32.mrb[3].mxu1 }
 0x1eb   : > { %1140 = vpow2.f32 %v1013_v13  ;;  %v839_v17 = vadd.f32 %v1006_v35, %v838_v16 }
 0x1ec   : > { %v1016_v18 = vmul.f32 -1.442695, %v844_v15 }
 0x1ed   : > { %v1015_v19 = vmul.f32 -1.442695, %v839_v17  ;;  %v1078_v20 = vpop.f32.mrb[4].mxu1 }
 0x1ee   : > { %1142 = vpow2.f32 %v1016_v18  ;;  %v854_v21 = vadd.f32 %v1078_v20, %v1006_v35  ;;  %v848_v22 = vpop.f32.mrb[5].mxu1 }
 0x1ef   : > { %1144 = vpow2.f32 %v1015_v19  ;;  %v849_v23 = vadd.f32 %v1006_v35, %v848_v22 }
 0x1f0   : > { %v1018_v24 = vmul.f32 -1.442695, %v854_v21 }
 0x1f1   : > { %v1017_v25 = vmul.f32 -1.442695, %v849_v23 }
 0x1f2   : > { %1146 = vpow2.f32 %v1018_v24 }
 0x1f3   : > { %1148 = vpow2.f32 %v1017_v25 }
 0x1f4   : > { %v1139_v26 = vpop.eup %1138 }
 0x1f5   : > { %v1141_v27 = vpop.eup %1140  ;;  %v881_v28 = vadd.f32 1.0, %v1139_v26 }
 0x1f6   : > { %v880_v29 = vadd.f32 1.0, %v1141_v27 }
 0x1f7   : > { %1150 = vrcp.f32 %v881_v28 }
 0x1f8   : > { %v1143_v30 = vpop.eup %1142  ;;  %1152 = vrcp.f32 %v880_v29 }
 0x1f9   : > { %v1145_v42 = vpop.eup %1144  ;;  %v883_v44 = vadd.f32 1.0, %v1143_v30 }
 0x1fa   : > { %v882_v47 = vadd.f32 1.0, %v1145_v42 }
 0x1fb   : > { %1154 = vrcp.f32 %v883_v44 }
 0x1fc   : > { %v1147_v48 = vpop.eup %1146  ;;  %1156 = vrcp.f32 %v882_v47 }
 0x1fd   : > { %v1149_v32 = vpop.eup %1148  ;;  %v885_v38 = vadd.f32 1.0, %v1147_v48 }
 0x1fe   : > { %v884_v51 = vadd.f32 1.0, %v1149_v32 }
 0x1ff   : > { %1158 = vrcp.f32 %v885_v38 }
 0x200   : > { %1160 = vrcp.f32 %v884_v51 }
 0x201   : > { %v1151_v49 = vpop.eup %1150 }
 0x202   : > { %v1153_v54 = vpop.eup %1152  ;;  %v899_v55 = vsel %vm1310_vm5, %v834_v9, %v1151_v49 }
 0x203   : > { %905 = vst [vmem:[%s342_s20 + $0x8] sm:$0xff] %v899_v55  ;;  %v898_v37 = vsel %vm1310_vm5, %v829_v11, %v1153_v54 }
 0x204   : > { %904 = vst [vmem:[%s342_s20] sm:$0xff] %v898_v37 }
 0x205   : > { %v1155_v34 = vpop.eup %1154 }
 0x206   : > { %v1157_v41 = vpop.eup %1156  ;;  %v901_v43 = vsel %vm1310_vm5, %v844_v15, %v1155_v34 }
 0x207   : > { %907 = vst [vmem:[%s342_s20 + $0x18] sm:$0xff] %v901_v43  ;;  %v900_v39 = vsel %vm1310_vm5, %v839_v17, %v1157_v41 }
 0x208   : > { %906 = vst [vmem:[%s342_s20 + $0x10] sm:$0xff] %v900_v39 }
 0x209   : > { %v1159_v57 = vpop.eup %1158 }
 0x20a   : > { %v1161_v58 = vpop.eup %1160  ;;  %v903_v52 = vsel %vm1310_vm5, %v854_v21, %v1159_v57 }
 0x20b   : > { %909 = vst [vmem:[%s342_s20 + $0x28] sm:$0xff] %v903_v52  ;;  %v902_v59 = vsel %vm1310_vm5, %v849_v23, %v1161_v58 }
 0x20c   : > { %908 = vst [vmem:[%s342_s20 + $0x20] sm:$0xff] %v902_v59 }
 0x20d PF: > { %s18_s27 = sadd.s32 1, %s1168_s27  }
 0x20e   : > { %p15_p4 = scmp.ge.s32.totalorder %s18_s27, 4  }
 0x210   :  { %17 = sbr.rel (!%p15_p4) target bundleno = 1 (0x1), region = 88 }

</bundles_post_ra>
